<compile_context>
chip_gen: v7x
topology: tpu7x:2x2x1
jax: 0.10.0
libtpu: 0.0.40
codegen_flags: <defaults>
</compile_context>

<pallas_src>
import math
from functools import partial

import jax
import jax.numpy as jnp
from jax import lax
from jax.experimental import pallas as pl
from jax.experimental.pallas import tpu as pltpu


def _round_up(x, m):
    return ((x + m - 1) // m) * m


def _cdiv(a, b):
    return (a + b - 1) // b


def _vmem_capacity_bytes():
    """Physical VMEM capacity; conservative (v7x-sized) fallback."""
    try:
        return int(pltpu.get_tpu_info().vmem_capacity_bytes)
    except Exception:
        return 64 * 1024 * 1024


def _patch_embed_kernel(*refs, eps, use_norm):
    if use_norm:
        x_ref, w_ref, b_ref, g_ref, bt_ref, o_ref = refs
    else:
        x_ref, w_ref, b_ref, o_ref = refs

    # (tm, K) @ (K, D) on the MXU, f32 accumulation, fused conv bias.
    acc = jnp.dot(x_ref[...], w_ref[...], preferred_element_type=jnp.float32)
    acc = acc + b_ref[...].astype(jnp.float32)

    if use_norm:
        # Fused per-row LayerNorm over embed_dim (one-pass statistics).
        # Must stay strictly per-row: the ragged tail block relies on garbage
        # rows never influencing valid rows.
        inv_d = 1.0 / acc.shape[-1]
        s1 = jnp.sum(acc, axis=-1, keepdims=True)
        s2 = jnp.sum(acc * acc, axis=-1, keepdims=True)
        mean = s1 * inv_d
        var = jnp.maximum(s2 * inv_d - mean * mean, 0.0)
        acc = (acc - mean) * lax.rsqrt(var + eps)
        acc = acc * g_ref[...].astype(jnp.float32) + bt_ref[...].astype(jnp.float32)

    o_ref[...] = acc.astype(o_ref.dtype)


def patch_embed_2d(x_nchw, proj_w, proj_b, norm_g=None, norm_b=None, *,
                   patch_size=4, eps=1e-5, compute_dtype=jnp.bfloat16,
                   out_dtype=None, block_rows=4096):
    """PatchEmbed2D forward.

    x_nchw:  (B, Cin, H, W)           -- PyTorch module input layout
    proj_w:  (embed_dim, Cin, ps, ps) -- torch Conv2d weight layout
    proj_b:  (embed_dim,)
    norm_g / norm_b: LayerNorm affine params, or None (norm_layer=None).
    Returns (B, H/ps, W/ps, embed_dim) in out_dtype (defaults to x dtype).
    """
    if isinstance(patch_size, int):
        ph = pw = patch_size
    else:
        ph, pw = patch_size
    B, Cin, H, W = x_nchw.shape
    D = proj_w.shape[0]
    assert H % ph == 0 and W % pw == 0, "image size must be divisible by patch"
    Hp, Wp = H // ph, W // pw
    K = Cin * ph * pw
    M = B * Hp * Wp
    if out_dtype is None:
        out_dtype = x_nchw.dtype
    use_norm = norm_g is not None
    if use_norm:
        assert norm_b is not None

    # Patch flatten (space-to-depth) fused with the compute-dtype downcast.
    # (ci, ky, kx) ordering matches torch Conv2d weight flattening.
    p = x_nchw.astype(compute_dtype).reshape(B, Cin, Hp, ph, Wp, pw)
    p = jnp.transpose(p, (0, 2, 4, 1, 3, 5)).reshape(M, K)
    w2 = jnp.transpose(proj_w.reshape(D, K), (1, 0)).astype(compute_dtype)  # (K, D)
    b2 = proj_b.reshape(1, D).astype(jnp.float32)
    extra = []
    if use_norm:
        extra = [norm_g.reshape(1, D).astype(jnp.float32),
                 norm_b.reshape(1, D).astype(jnp.float32)]

    in_b = jnp.dtype(compute_dtype).itemsize
    ob = jnp.dtype(out_dtype).itemsize

    def tile_bytes(rows):
        return (2 * rows * K * in_b      # double-buffered patch tiles
                + 2 * rows * D * ob      # double-buffered output tiles
                + K * D * in_b           # resident weight
                + 8 * D * 4)             # bias / gamma / beta (+ slack)

    vmem_cap = _vmem_capacity_bytes()

    # Row tile: as big as block_rows allows, but (a) keep >=8 grid steps when
    # M is large enough (v7x: both TensorCores get work), (b) never shrink
    # below 256 rows just for step count, (c) multiple of 16 (bf16 sublane
    # packing), (d) within ~45% of physical VMEM.  M itself is never padded.
    tm = min(block_rows, max(256, _round_up(_cdiv(M, 8), 16)))
    tm = min(tm, _round_up(M, 16))
    tm = max(16, _round_up(tm, 16))
    budget = max(int(0.45 * vmem_cap), 4 * 1024 * 1024)
    while tm > 16 and tile_bytes(tm) > budget:
        tm = max(16, _round_up(tm // 2, 16))
    grid = (pl.cdiv(M, tm),)

    vmem_limit = int(min(int(0.85 * vmem_cap),
                         max(4 * tile_bytes(tm), 32 * 1024 * 1024)))

    in_specs = [
        pl.BlockSpec((tm, K), lambda i: (i, 0)),   # patch-row tile
        pl.BlockSpec((K, D), lambda i: (0, 0)),    # resident weight
        pl.BlockSpec((1, D), lambda i: (0, 0)),    # conv bias
    ]
    if use_norm:
        in_specs += [pl.BlockSpec((1, D), lambda i: (0, 0)),   # LN gamma
                     pl.BlockSpec((1, D), lambda i: (0, 0))]   # LN beta

    out = pl.pallas_call(
        partial(_patch_embed_kernel, eps=eps, use_norm=use_norm),
        out_shape=jax.ShapeDtypeStruct((M, D), out_dtype),
        grid=grid,
        in_specs=in_specs,
        out_specs=pl.BlockSpec((tm, D), lambda i: (i, 0)),
        compiler_params=pltpu.CompilerParams(
            dimension_semantics=("parallel",),
            vmem_limit_bytes=vmem_limit),
    )(p, w2, b2, *extra)

    return out.reshape(B, Hp, Wp, D)


# ----------------------------------------------------------------------------
if __name__ == "__main__":
    key = jax.random.PRNGKey(0)
    k1, k2, k3 = jax.random.split(key, 3)

    # Module-consistent small shapes: patch_size=4, in_chans=3, embed_dim=96.
    B, Cin, H, W = 2, 3, 32, 32
    ps, D = 4, 96
    x = jax.random.normal(k1, (B, Cin, H, W), jnp.float32)
    proj_w = (jax.random.normal(k2, (D, Cin, ps, ps), jnp.float32)
              * math.sqrt(2.0 / (Cin * ps * ps)))
    proj_b = 0.02 * jax.random.normal(k3, (D,), jnp.float32)
    norm_g = jnp.ones((D,), jnp.float32)
    norm_b = jnp.zeros((D,), jnp.float32)

    # Pure-JAX reference: conv (stride=kernel=ps) + permute + bias (+ LN).
    y = lax.conv_general_dilated(x, proj_w, window_strides=(ps, ps),
                                 padding='VALID',
                                 dimension_numbers=('NCHW', 'OIHW', 'NCHW'),
                                 precision=lax.Precision.HIGHEST)
    y = jnp.transpose(y, (0, 2, 3, 1)) + proj_b
    mean = jnp.mean(y, axis=-1, keepdims=True)
    var = jnp.mean(jnp.square(y - mean), axis=-1, keepdims=True)
    y_ln = (y - mean) * lax.rsqrt(var + 1e-5) * norm_g + norm_b

    fn_f32 = jax.jit(partial(patch_embed_2d, patch_size=ps,
                             compute_dtype=jnp.float32))
    fn_f32_ragged = jax.jit(partial(patch_embed_2d, patch_size=ps,
                                    compute_dtype=jnp.float32, block_rows=48))
    fn_bf16 = jax.jit(partial(patch_embed_2d, patch_size=ps))  # default bf16

    # norm_layer=nn.LayerNorm path (as used when embedding into VSSM).
    out_ln = jax.block_until_ready(fn_f32(x, proj_w, proj_b, norm_g, norm_b))
    # norm_layer=None path (the module's default).
    out_nonorm = jax.block_until_ready(fn_f32(x, proj_w, proj_b))
    # Ragged grid (M=128, tm=48): exercises the no-pad masked tail block.
    out_ragged = jax.block_until_ready(fn_f32_ragged(x, proj_w, proj_b,
                                                     norm_g, norm_b))
    # Default bf16-operand path (f32 accumulation / LN / output).
    out_bf16 = jax.block_until_ready(fn_bf16(x, proj_w, proj_b, norm_g, norm_b))

    Hp, Wp = H // ps, W // ps
    for o in (out_ln, out_nonorm, out_ragged, out_bf16):
        assert o.shape == (B, Hp, Wp, D), o.shape
        assert bool(jnp.all(jnp.isfinite(o)))

    assert bool(jnp.allclose(out_ln, y_ln, atol=1e-2, rtol=1e-2)), \
        float(jnp.max(jnp.abs(out_ln - y_ln)))
    assert bool(jnp.allclose(out_nonorm, y, atol=1e-2, rtol=1e-2)), \
        float(jnp.max(jnp.abs(out_nonorm - y)))
    assert bool(jnp.allclose(out_ragged, y_ln, atol=1e-2, rtol=1e-2)), \
        float(jnp.max(jnp.abs(out_ragged - y_ln)))
    assert bool(jnp.allclose(out_bf16, y_ln, atol=7e-2, rtol=7e-2)), \
        float(jnp.max(jnp.abs(out_bf16 - y_ln)))

    print("KERNEL_OK")
</pallas_src>

<mosaic_0001>
module attributes {stable_mosaic.version = 11 : i64} {
  func.func @_patch_embed_kernel(%arg0: i32, %arg1: memref<128x48xf32, #tpu.memory_space<vmem>>, %arg2: memref<48x96xf32, #tpu.memory_space<vmem>>, %arg3: memref<1x96xf32, #tpu.memory_space<vmem>>, %arg4: memref<1x96xf32, #tpu.memory_space<vmem>>, %arg5: memref<1x96xf32, #tpu.memory_space<vmem>>, %arg6: memref<128x96xf32, #tpu.memory_space<vmem>>) attributes {dimension_semantics = [#tpu.dimension_semantics<parallel>], iteration_bounds = array<i64: 1>, scalar_prefetch = 0 : i64, scratch_operands = 0 : i64, tpu.core_type = #tpu.core_type<tc>, window_params = [{transform_indices = @transform_0, window_bounds = array<i64: 128, 48>}, {pipeline_mode = #tpu.pipeline_mode<synchronous>, transform_indices = @transform_1, window_bounds = array<i64: 48, 96>}, {pipeline_mode = #tpu.pipeline_mode<synchronous>, transform_indices = @transform_2, window_bounds = array<i64: 1, 96>}, {pipeline_mode = #tpu.pipeline_mode<synchronous>, transform_indices = @transform_3, window_bounds = array<i64: 1, 96>}, {pipeline_mode = #tpu.pipeline_mode<synchronous>, transform_indices = @transform_4, window_bounds = array<i64: 1, 96>}, {transform_indices = @transform_5, window_bounds = array<i64: 128, 96>}]} {
    %c0 = arith.constant 0 : index
    %c0_0 = arith.constant 0 : index
    %0 = vector.load %arg1[%c0, %c0_0] : memref<128x48xf32, #tpu.memory_space<vmem>>, vector<128x48xf32>
    %c0_1 = arith.constant 0 : index
    %c0_2 = arith.constant 0 : index
    %1 = vector.load %arg2[%c0_1, %c0_2] : memref<48x96xf32, #tpu.memory_space<vmem>>, vector<48x96xf32>
    %cst = arith.constant dense<0.000000e+00> : vector<128x96xf32>
    %2 = tpu.matmul %0, %1, %cst {dimension_numbers = #tpu.dot_dimension_numbers<[1], [0], [0], [1], [0, 0, 1, 1], [], []>} : vector<128x48xf32>, vector<48x96xf32>, vector<128x96xf32> -> vector<128x96xf32>
    %c0_3 = arith.constant 0 : index
    %c0_4 = arith.constant 0 : index
    %3 = vector.load %arg3[%c0_3, %c0_4] : memref<1x96xf32, #tpu.memory_space<vmem>>, vector<1x96xf32>
    %4 = vector.broadcast %3 : vector<1x96xf32> to vector<128x96xf32>
    %5 = arith.addf %2, %4 : vector<128x96xf32>
    %cst_5 = arith.constant dense<0.000000e+00> : vector<128xf32>
    %6 = vector.multi_reduction <add>, %5, %cst_5 [1] : vector<128x96xf32> to vector<128xf32>
    %7 = vector.shape_cast %6 : vector<128xf32> to vector<128x1xf32>
    %8 = arith.mulf %5, %5 : vector<128x96xf32>
    %cst_6 = arith.constant dense<0.000000e+00> : vector<128xf32>
    %9 = vector.multi_reduction <add>, %8, %cst_6 [1] : vector<128x96xf32> to vector<128xf32>
    %10 = vector.shape_cast %9 : vector<128xf32> to vector<128x1xf32>
    %cst_7 = arith.constant 0.010416667 : f32
    %11 = vector.broadcast %cst_7 : f32 to vector<128x1xf32>
    %12 = arith.mulf %7, %11 : vector<128x1xf32>
    %cst_8 = arith.constant 0.010416667 : f32
    %13 = vector.broadcast %cst_8 : f32 to vector<128x1xf32>
    %14 = arith.mulf %10, %13 : vector<128x1xf32>
    %15 = arith.mulf %12, %12 : vector<128x1xf32>
    %16 = arith.subf %14, %15 : vector<128x1xf32>
    %cst_9 = arith.constant 0.000000e+00 : f32
    %17 = vector.broadcast %cst_9 : f32 to vector<128x1xf32>
    %18 = arith.maximumf %16, %17 : vector<128x1xf32>
    %19 = vector.broadcast %12 : vector<128x1xf32> to vector<128x96xf32>
    %20 = arith.subf %5, %19 : vector<128x96xf32>
    %cst_10 = arith.constant 9.99999974E-6 : f32
    %21 = vector.broadcast %cst_10 : f32 to vector<128x1xf32>
    %22 = arith.addf %18, %21 : vector<128x1xf32>
    %23 = math.rsqrt %22 : vector<128x1xf32>
    %24 = vector.broadcast %23 : vector<128x1xf32> to vector<128x96xf32>
    %25 = arith.mulf %20, %24 : vector<128x96xf32>
    %c0_11 = arith.constant 0 : index
    %c0_12 = arith.constant 0 : index
    %26 = vector.load %arg4[%c0_11, %c0_12] : memref<1x96xf32, #tpu.memory_space<vmem>>, vector<1x96xf32>
    %27 = vector.broadcast %26 : vector<1x96xf32> to vector<128x96xf32>
    %28 = arith.mulf %25, %27 : vector<128x96xf32>
    %c0_13 = arith.constant 0 : index
    %c0_14 = arith.constant 0 : index
    %29 = vector.load %arg5[%c0_13, %c0_14] : memref<1x96xf32, #tpu.memory_space<vmem>>, vector<1x96xf32>
    %30 = vector.broadcast %29 : vector<1x96xf32> to vector<128x96xf32>
    %31 = arith.addf %28, %30 : vector<128x96xf32>
    %c0_15 = arith.constant 0 : index
    %c0_16 = arith.constant 0 : index
    %32 = vector.load %arg6[%c0_15, %c0_16] : memref<128x96xf32, #tpu.memory_space<vmem>>, vector<128x96xf32>
    tpu.vector_store %arg6[%c0_15, %c0_16], %31 {strides = array<i32>} : memref<128x96xf32, #tpu.memory_space<vmem>>, vector<128x96xf32>,
    return
  }
  func.func @transform_0(%arg0: i32) -> (i32, i32) {
    %c0_i32 = arith.constant 0 : i32
    %c0_i32_0 = arith.constant 0 : i32
    return %arg0, %c0_i32 : i32, i32
  }
  func.func @transform_1(%arg0: i32) -> (i32, i32) {
    %c0_i32 = arith.constant 0 : i32
    %c0_i32_0 = arith.constant 0 : i32
    %c0_i32_1 = arith.constant 0 : i32
    return %c0_i32, %c0_i32_0 : i32, i32
  }
  func.func @transform_2(%arg0: i32) -> (i32, i32) {
    %c0_i32 = arith.constant 0 : i32
    %c0_i32_0 = arith.constant 0 : i32
    %c0_i32_1 = arith.constant 0 : i32
    return %c0_i32, %c0_i32_0 : i32, i32
  }
  func.func @transform_3(%arg0: i32) -> (i32, i32) {
    %c0_i32 = arith.constant 0 : i32
    %c0_i32_0 = arith.constant 0 : i32
    %c0_i32_1 = arith.constant 0 : i32
    return %c0_i32, %c0_i32_0 : i32, i32
  }
  func.func @transform_4(%arg0: i32) -> (i32, i32) {
    %c0_i32 = arith.constant 0 : i32
    %c0_i32_0 = arith.constant 0 : i32
    %c0_i32_1 = arith.constant 0 : i32
    return %c0_i32, %c0_i32_0 : i32, i32
  }
  func.func @transform_5(%arg0: i32) -> (i32, i32) {
    %c0_i32 = arith.constant 0 : i32
    %c0_i32_0 = arith.constant 0 : i32
    return %arg0, %c0_i32 : i32, i32
  }
}

</mosaic_0001>

<bundles_post_ra>
// kernel: patch_embed_2d.1
= control target key start
LH: loop header
LB: loop body
LE: loop exit
PB: predicated region body
PF: predicated region fallthrough
CT: control target
= control target key end

     0   :  { %vm50_vm0 = vcmask 392192   ;;  %s1132_s0 = inlined_call_operand.vmem [shape: f32[128,48], index: 0, kind: input, shape index: {}]   ;;  %s1133_s1 = inlined_call_operand.vmem [shape: f32[48,96], index: 1, kind: input, shape index: {}]   ;;  %s1134_s2 = inlined_call_operand.vmem [shape: f32[1,96], index: 2, kind: input, shape index: {}]   ;;  %s1135_s3 = inlined_call_operand.vmem [shape: f32[1,96], index: 3, kind: input, shape index: {}]   ;;  %s1136_s4 = inlined_call_operand.vmem [shape: f32[1,96], index: 4, kind: input, shape index: {}]   ;;  %s1137_s5 = inlined_call_operand.hbm [shape: f32[128,96], index: 5, kind: output, shape index: {}]  }
   0x1   :  { %v37_v0 = vld [vmem:[%s1133_s1] sm:$0xff]  ;;  %v38_v1 = vld [vmem:[%s1133_s1 + $0x8] sm:$0xff]  ;;  %v39_v2 = vld [vmem:[%s1133_s1 + $0x10] sm:$0xff] }
   0x2   :  { %v656_v3 = vpack.c.bf16 %v38_v1, %v37_v0  ;;  %v40_v4 = vld [vmem:[%s1133_s1 + $0x18] sm:$0xff]  ;;  %v41_v6 = vld [vmem:[%s1133_s1 + $0x20] sm:$0xff]  ;;  %v42_v7 = vld [vmem:[%s1133_s1 + $0x28] sm:$0xff] }
   0x3   :  { %v660_v5 = vpack.c.bf16 %v40_v4, %v39_v2  ;;  %v21_v8 = vld [vmem:[%s1132_s0] sm:$0xff]  ;;  %v664_v10 = vpack.c.bf16 %v42_v7, %v41_v6 }
   0x4   :  { %657 = vmatprep.subr.bf16.mxu0 %v656_v3  ;;  %668 = vmatprep.subr.bf16.mxu1 %v656_v3  ;;  %v29_v9 = vld [vmem:[%s1132_s0 + $0x40] sm:$0xff] }
   0x5   :  { %659 = vmatpush3.bf16.msra.mxu0 %v656_v3  ;;  %671 = vmatpush3.bf16.msra.mxu1 %v656_v3 }
   0x6   :  { %661 = vmatprep.subr.bf16.mxu0 %v660_v5  ;;  %669 = vmatprep.subr.bf16.mxu1 %v660_v5 }
   0x7   :  { %632 = vmatprep.mubr.msk.f32.mxu0 %vm50_vm0, %v21_v8  ;;  %644 = vmatprep.mubr.msk.f32.mxu1 %vm50_vm0, %v29_v9 }
   0x8   :  { %10 = vsyncpa [#allocation3], 0  ;;  %v22_v11 = vld [vmem:[%s1132_s0 + $0x8] sm:$0xff]  ;;  %v23_v13 = vld [vmem:[%s1132_s0 + $0x10] sm:$0xff]  ;;  %vm244_vm1 = vcmask 785408  }
   0x9   :  { %663 = vmatpush3.bf16.msra.mxu0 %v660_v5  ;;  %672 = vmatpush3.bf16.msra.mxu1 %v660_v5  ;;  %v30_v12 = vld [vmem:[%s1132_s0 + $0x48] sm:$0xff]  ;;  %v31_v14 = vld [vmem:[%s1132_s0 + $0x50] sm:$0xff]  ;;  %v24_v15 = vld [vmem:[%s1132_s0 + $0x18] sm:$0xff] }
   0xa   :  { %665 = vmatprep.subr.bf16.mxu0 %v664_v10  ;;  %670 = vmatprep.subr.bf16.mxu1 %v664_v10  ;;  %v32_v16 = vld [vmem:[%s1132_s0 + $0x58] sm:$0xff]  ;;  %v25_v17 = vld [vmem:[%s1132_s0 + $0x20] sm:$0xff]  ;;  %v26_v19 = vld [vmem:[%s1132_s0 + $0x28] sm:$0xff] }
   0xb   :  { %v33_v18 = vld [vmem:[%s1132_s0 + $0x60] sm:$0xff]  ;;  %v34_v20 = vld [vmem:[%s1132_s0 + $0x68] sm:$0xff]  ;;  %v27_v21 = vld [vmem:[%s1132_s0 + $0x30] sm:$0xff] }
   0xc   :  { %v35_v22 = vld [vmem:[%s1132_s0 + $0x70] sm:$0xff]  ;;  %v28_v23 = vld [vmem:[%s1132_s0 + $0x38] sm:$0xff]  ;;  %v851_v25 = vld [vmem:[%s1134_s2] ss:$0 sm:$0xff] }
   0xd   :  { %667 = vmatpush3.bf16.msra.mxu0 %v664_v10  ;;  %673 = vmatpush3.bf16.msra.mxu1 %v664_v10  ;;  %v36_v24 = vld [vmem:[%s1132_s0 + $0x78] sm:$0xff] }
  0x10   :  { %633 = vmatmul.mubr.msk.f32.vlgmr.msra.gmra.mrb[0].mxu0 %vm50_vm0, %v22_v11  ;;  %645 = vmatmul.mubr.msk.f32.vlgmr.msra.gmra.mrb[0].mxu1 %vm50_vm0, %v30_v12 }
  0x11   :  { %635 = vmatprep.mubr.msk.f32.mxu0 %vm50_vm0, %v23_v13  ;;  %647 = vmatprep.mubr.msk.f32.mxu1 %vm50_vm0, %v31_v14 }
  0x14   :  { %636 = vmatmul.mubr.msk.f32.gmra.mrb[2].mxu0 %vm50_vm0, %v24_v15  ;;  %648 = vmatmul.mubr.msk.f32.gmra.mrb[2].mxu1 %vm50_vm0, %v32_v16 }
  0x15   :  { %638 = vmatprep.mubr.msk.f32.mxu0 %vm50_vm0, %v25_v17  ;;  %650 = vmatprep.mubr.msk.f32.mxu1 %vm50_vm0, %v33_v18 }
  0x18   :  { %639 = vmatmul.mubr.msk.f32.gmra.mrb[4].mxu0 %vm50_vm0, %v26_v19  ;;  %651 = vmatmul.mubr.msk.f32.gmra.mrb[4].mxu1 %vm50_vm0, %v34_v20 }
  0x19   :  { %641 = vmatprep.mubr.msk.f32.mxu0 %vm50_vm0, %v27_v21  ;;  %653 = vmatprep.mubr.msk.f32.mxu1 %vm50_vm0, %v35_v22 }
  0x1c   :  { %642 = vmatmul.mubr.msk.f32.gmra.mrb[6].mxu0 %vm50_vm0, %v28_v23  ;;  %654 = vmatmul.mubr.msk.f32.gmra.mrb[6].mxu1 %vm50_vm0, %v36_v24 }
  0xe3   :  { %v634_v26 = vpop.f32.mrb[0].mxu0  ;;  %v646_v27 = vpop.f32.mrb[0].mxu1 }
  0xe4   :  { %v854_v28 = vadd.f32 %v634_v26, %v851_v25  ;;  %v857_v29 = vadd.f32 %v646_v27, %v851_v25  ;;  %v165_v30 = vpop.f32.mrb[1].mxu0  ;;  %v205_v31 = vpop.f32.mrb[1].mxu1 }
  0xe5   :  { %v860_v32 = vadd.f32 %v851_v25, %v165_v30  ;;  %v869_v40 = vadd.f32 %v851_v25, %v205_v31 }
  0xe6   :  { %v272_v33 = vsel %vm244_vm1, %v857_v29, 0.0  ;;  %v248_v34 = vsel %vm244_vm1, %v854_v28, 0.0  ;;  %v294_v35 = vmul.f32 %v854_v28, %v854_v28  ;;  %v302_v43 = vmul.f32 %v857_v29, %v857_v29 }
  0xe7   :  { %273 = vadd.xlane.f32.xlu1 %v272_v33  ;;  %249 = vadd.xlane.f32.xlu0 %v248_v34  ;;  %v637_v36 = vpop.f32.mrb[2].mxu0  ;;  %v649_v37 = vpop.f32.mrb[2].mxu1  ;;  %v245_v42 = vsel %vm244_vm1, %v860_v32, 0.0  ;;  %v269_v50 = vsel %vm244_vm1, %v869_v40, 0.0  ;;  %v293_v51 = vmul.f32 %v860_v32, %v860_v32  ;;  %v301_v59 = vmul.f32 %v869_v40, %v869_v40 }
  0xe8   :  { %v175_v38 = vpop.f32.mrb[3].mxu0  ;;  %v215_v39 = vpop.f32.mrb[3].mxu1  ;;  %v312_v41 = vsel %vm244_vm1, %v294_v35, 0.0  ;;  %v877_v46 = vadd.f32 %v637_v36, %v851_v25  ;;  %v336_v49 = vsel %vm244_vm1, %v302_v43, 0.0  ;;  %v885_v54 = vadd.f32 %v649_v37, %v851_v25 }
  0xe9   :  { %v309_v58 = vsel %vm244_vm1, %v293_v51, 0.0  ;;  %v895_v61 = vadd.f32 %v851_v25, %v175_v38  ;;  %v898_v62 = vadd.f32 %v851_v25, %v215_v39  ;;  %v333_v63 = vsel %vm244_vm1, %v301_v59, 0.0 }
  0xea   :  { %v254_v55 = vsel %vm244_vm1, %v877_v46, 0.0  ;;  %v278_v60 = vsel %vm244_vm1, %v885_v54, 0.0  ;;  %v296_v2 = vmul.f32 %v877_v46, %v877_v46  ;;  %v304_v6 = vmul.f32 %v885_v54, %v885_v54 }
  0xeb   :  { %313 = vadd.xlane.f32.xlu1 %v312_v41  ;;  %246 = vadd.xlane.f32.xlu0 %v245_v42  ;;  %v640_v44 = vpop.f32.mrb[4].mxu0  ;;  %v652_v45 = vpop.f32.mrb[4].mxu1  ;;  %v251_v0 = vsel %vm244_vm1, %v895_v61, 0.0  ;;  %v275_v1 = vsel %vm244_vm1, %v898_v62, 0.0  ;;  %v295_v3 = vmul.f32 %v895_v61, %v895_v61  ;;  %v303_v7 = vmul.f32 %v898_v62, %v898_v62 }
  0xec   :  { %v185_v47 = vpop.f32.mrb[5].mxu0  ;;  %v225_v48 = vpop.f32.mrb[5].mxu1  ;;  %v318_v4 = vsel %vm244_vm1, %v296_v2, 0.0  ;;  %v916_v8 = vadd.f32 %v640_v44, %v851_v25  ;;  %v342_v10 = vsel %vm244_vm1, %v304_v6, 0.0  ;;  %v924_v12 = vadd.f32 %v652_v45, %v851_v25 }
  0xed   :  { %v315_v5 = vsel %vm244_vm1, %v295_v3, 0.0  ;;  %v919_v9 = vadd.f32 %v851_v25, %v185_v47  ;;  %v339_v11 = vsel %vm244_vm1, %v303_v7, 0.0  ;;  %v927_v13 = vadd.f32 %v851_v25, %v225_v48 }
  0xee   :  { %v260_v14 = vsel %vm244_vm1, %v916_v8, 0.0  ;;  %v284_v16 = vsel %vm244_vm1, %v924_v12, 0.0  ;;  %v298_v18 = vmul.f32 %v916_v8, %v916_v8  ;;  %v306_v22 = vmul.f32 %v924_v12, %v924_v12 }
  0xef   :  { %337 = vadd.xlane.f32.xlu1 %v336_v49  ;;  %270 = vadd.xlane.f32.xlu0 %v269_v50  ;;  %v643_v52 = vpop.f32.mrb[6].mxu0  ;;  %v655_v53 = vpop.f32.mrb[6].mxu1  ;;  %v257_v15 = vsel %vm244_vm1, %v919_v9, 0.0  ;;  %v281_v17 = vsel %vm244_vm1, %v927_v13, 0.0  ;;  %v297_v19 = vmul.f32 %v919_v9, %v919_v9  ;;  %v305_v23 = vmul.f32 %v927_v13, %v927_v13 }
  0xf0   :  { %v195_v56 = vpop.f32.mrb[7].mxu0  ;;  %v235_v57 = vpop.f32.mrb[7].mxu1  ;;  %v324_v20 = vsel %vm244_vm1, %v298_v18, 0.0  ;;  %v948_v24 = vadd.f32 %v643_v52, %v851_v25  ;;  %v348_v27 = vsel %vm244_vm1, %v306_v22, 0.0  ;;  %v956_v31 = vadd.f32 %v655_v53, %v851_v25 }
  0xf1   :  { %v321_v21 = vsel %vm244_vm1, %v297_v19, 0.0  ;;  %v951_v26 = vadd.f32 %v851_v25, %v195_v56  ;;  %v345_v30 = vsel %vm244_vm1, %v305_v23, 0.0  ;;  %v959_v33 = vadd.f32 %v851_v25, %v235_v57 }
  0xf2   :  { %v266_v34 = vsel %vm244_vm1, %v948_v24, 0.0  ;;  %v290_v36 = vsel %vm244_vm1, %v956_v31, 0.0  ;;  %v300_v38 = vmul.f32 %v948_v24, %v948_v24  ;;  %v308_v42 = vmul.f32 %v956_v31, %v956_v31 }
  0xf3   :  { %255 = vadd.xlane.f32.xlu1 %v254_v55  ;;  %310 = vadd.xlane.f32.xlu0 %v309_v58  ;;  %v263_v35 = vsel %vm244_vm1, %v951_v26, 0.0  ;;  %v287_v37 = vsel %vm244_vm1, %v959_v33, 0.0  ;;  %v299_v25 = vmul.f32 %v951_v26, %v951_v26  ;;  %v307_v43 = vmul.f32 %v959_v33, %v959_v33 }
  0xf4   :  { %v330_v39 = vsel %vm244_vm1, %v300_v38, 0.0  ;;  %v354_v44 = vsel %vm244_vm1, %v308_v42, 0.0 }
  0xf5   :  { %v327_v41 = vsel %vm244_vm1, %v299_v25, 0.0  ;;  %v351_v45 = vsel %vm244_vm1, %v307_v43, 0.0 }
  0xf7   :  { %279 = vadd.xlane.f32.xlu1 %v278_v60  ;;  %334 = vadd.xlane.f32.xlu0 %v333_v63 }
  0xfb   :  { %252 = vadd.xlane.f32.xlu1 %v251_v0  ;;  %276 = vadd.xlane.f32.xlu0 %v275_v1 }
  0xff   :  { %319 = vadd.xlane.f32.xlu1 %v318_v4  ;;  %316 = vadd.xlane.f32.xlu0 %v315_v5 }
 0x103   :  { %343 = vadd.xlane.f32.xlu1 %v342_v10  ;;  %340 = vadd.xlane.f32.xlu0 %v339_v11 }
 0x107   :  { %261 = vadd.xlane.f32.xlu1 %v260_v14  ;;  %258 = vadd.xlane.f32.xlu0 %v257_v15 }
 0x10b   :  { %285 = vadd.xlane.f32.xlu1 %v284_v16  ;;  %282 = vadd.xlane.f32.xlu0 %v281_v17 }
 0x10f   :  { %325 = vadd.xlane.f32.xlu1 %v324_v20  ;;  %322 = vadd.xlane.f32.xlu0 %v321_v21 }
 0x113   :  { %349 = vadd.xlane.f32.xlu1 %v348_v27  ;;  %346 = vadd.xlane.f32.xlu0 %v345_v30 }
 0x117   :  { %267 = vadd.xlane.f32.xlu1 %v266_v34  ;;  %264 = vadd.xlane.f32.xlu0 %v263_v35 }
 0x11b   :  { %291 = vadd.xlane.f32.xlu1 %v290_v36  ;;  %288 = vadd.xlane.f32.xlu0 %v287_v37  ;;  %v997_v37 = vld [vmem:[%s1135_s3] ss:$0 sm:$0xff]  ;;  %s733_s3 = smov [#allocation2]  }
 0x11f   :  { %331 = vadd.xlane.f32.xlu1 %v330_v39  ;;  %328 = vadd.xlane.f32.xlu0 %v327_v41 }
 0x123   :  { %355 = vadd.xlane.f32.xlu1 %v354_v44  ;;  %352 = vadd.xlane.f32.xlu0 %v351_v45 }
 0x174   :  { %v274_v47 = vpop.xlane.xlu1 %273  ;;  %v250_v48 = vpop.xlane.xlu0 %249 }
 0x175   :  { %v358_v49 = vmul.f32 0.010416667, %v250_v48  ;;  %v366_v52 = vmul.f32 0.010416667, %v274_v47 }
 0x177   :  { %v390_v53 = vmul.f32 %v358_v49, %v358_v49  ;;  %v398_v60 = vmul.f32 %v366_v52, %v366_v52  ;;  %v438_v35 = vsub.f32 %v854_v28, %v358_v49  ;;  %v1008_v28 = vld [vmem:[%s1136_s4] ss:$0 sm:$0xff]  ;;  %v446_v49 = vsub.f32 %v857_v29, %v366_v52  ;;  %s568_s4 = sshll.u32 %s733_s3, 4  ;;  %s569_s4 = int_to_ptr.vmem [resolvable:$true] %s568_s4 }
 0x178   :  { %v314_v50 = vpop.xlane.xlu1 %313  ;;  %v247_v51 = vpop.xlane.xlu0 %246  ;;  %s709_s14 = scalar_lea.vmem %s569_s4, 2048  ;;  %p714_p1 = scmp.lt.s32.totalorder %s569_s4, %s569_s4 }
 0x179   :  { %v374_v55 = vmul.f32 0.010416667, %v314_v50  ;;  %v981_v57 = vmul.f32 0.010416667, %v247_v51  ;;  %p710_p0 = scmp.ne.s32.totalorder %s569_s4, %s709_s14  ;;  %p715_p2 = scmp.lt.s32.totalorder %s709_s14, %s709_s14 }
 0x17b   :  { %v406_v56 = vsub.f32 %v374_v55, %v390_v53  ;;  %v389_v3 = vmul.f32 %v981_v57, %v981_v57  ;;  %v437_v52 = vsub.f32 %v860_v32, %v981_v57  ;;  %p716_p3 = por %p715_p2, %p714_p1 }
 0x17c   :  { %v338_v58 = vpop.xlane.xlu1 %337  ;;  %v271_v59 = vpop.xlane.xlu0 %270 }
 0x17d   :  { %v422_v63 = vmax.f32 %v406_v56, 0.0  ;;  %v382_v0 = vmul.f32 0.010416667, %v338_v58  ;;  %v985_v7 = vmul.f32 0.010416667, %v271_v59  ;;  %p717_p4 = pnand %p716_p3, %p710_p0 }
 0x17f   :  { %v454_v1 = vadd.f32 1e-05, %v422_v63  ;;  %v414_v2 = vsub.f32 %v382_v0, %v398_v60  ;;  %v397_v17 = vmul.f32 %v985_v7, %v985_v7  ;;  %v445_v32 = vsub.f32 %v869_v40, %v985_v7 }
 0x180   :  { %v256_v4 = vpop.xlane.xlu1 %255  ;;  %v311_v5 = vpop.xlane.xlu0 %310 }
 0x181   :  { %677 = vrsqrt.f32 %v454_v1  ;;  %v430_v6 = vmax.f32 %v414_v2, 0.0  ;;  %v373_v10 = vmul.f32 0.010416667, %v311_v5  ;;  %v989_v22 = vmul.f32 0.010416667, %v256_v4 }
 0x183   :  { %v462_v11 = vadd.f32 1e-05, %v430_v6  ;;  %v405_v14 = vsub.f32 %v373_v10, %v389_v3  ;;  %v392_v39 = vmul.f32 %v989_v22, %v989_v22 }
 0x184   :  { %v280_v15 = vpop.xlane.xlu1 %279  ;;  %v335_v16 = vpop.xlane.xlu0 %334 }
 0x185   :  { %679 = vrsqrt.f32 %v462_v11  ;;  %v421_v18 = vmax.f32 %v405_v14, 0.0  ;;  %v381_v19 = vmul.f32 0.010416667, %v335_v16  ;;  %v1001_v41 = vmul.f32 0.010416667, %v280_v15 }
 0x187   :  { %v453_v20 = vadd.f32 1e-05, %v421_v18  ;;  %v413_v21 = vsub.f32 %v381_v19, %v397_v17  ;;  %v400_v59 = vmul.f32 %v1001_v41, %v1001_v41 }
 0x188   :  { %v253_v23 = vpop.xlane.xlu1 %252  ;;  %v277_v27 = vpop.xlane.xlu0 %276 }
 0x189   :  { %681 = vrsqrt.f32 %v453_v20  ;;  %v429_v30 = vmax.f32 %v413_v21, 0.0  ;;  %v991_v34 = vmul.f32 0.010416667, %v253_v23  ;;  %v1003_v42 = vmul.f32 0.010416667, %v277_v27 }
 0x18b   :  { %v678_v36 = vpop.eup %677  ;;  %v461_v38 = vadd.f32 1e-05, %v429_v30  ;;  %v391_v45 = vmul.f32 %v991_v34, %v991_v34  ;;  %v399_v60 = vmul.f32 %v1003_v42, %v1003_v42 }
 0x18c   :  { %v486_v25 = vmul.f32 %v678_v36, %v438_v35  ;;  %v320_v43 = vpop.xlane.xlu1 %319  ;;  %v317_v44 = vpop.xlane.xlu0 %316 }
 0x18d   :  { %683 = vrsqrt.f32 %v461_v38  ;;  %v376_v47 = vmul.f32 0.010416667, %v320_v43  ;;  %v375_v48 = vmul.f32 0.010416667, %v317_v44 }
 0x18e   :  { %v509_v50 = vmul.f32 %v997_v37, %v486_v25 }
 0x18f   :  { %v680_v51 = vpop.eup %679  ;;  %v408_v53 = vsub.f32 %v376_v47, %v392_v39  ;;  %v407_v55 = vsub.f32 %v375_v48, %v391_v45 }
 0x190   :  { %v532_v56 = vadd.f32 %v1008_v28, %v509_v50  ;;  %v494_v58 = vmul.f32 %v680_v51, %v446_v49  ;;  %v344_v63 = vpop.xlane.xlu1 %343  ;;  %v341_v0 = vpop.xlane.xlu0 %340  ;;  %v440_v51 = vsub.f32 %v877_v46, %v989_v22 }
 0x191   :  { %v424_v1 = vmax.f32 %v408_v53, 0.0  ;;  %v423_v2 = vmax.f32 %v407_v55, 0.0  ;;  %v384_v3 = vmul.f32 0.010416667, %v344_v63  ;;  %v383_v29 = vmul.f32 0.010416667, %v341_v0 }
 0x192   :  { %548 = vst.msk [vmem:[#allocation2 + $0x8] sm:$0xff] %vm244_vm1, %v532_v56  ;;  %v517_v4 = vmul.f32 %v997_v37, %v494_v58  ;;  %v439_v56 = vsub.f32 %v895_v61, %v991_v34  ;;  %v448_v63 = vsub.f32 %v885_v54, %v1001_v41 }
 0x193   :  { %v682_v5 = vpop.eup %681  ;;  %v456_v6 = vadd.f32 1e-05, %v424_v1  ;;  %v455_v10 = vadd.f32 1e-05, %v423_v2  ;;  %v416_v11 = vsub.f32 %v384_v3, %v400_v59  ;;  %v415_v14 = vsub.f32 %v383_v29, %v399_v60 }
 0x194   :  { %v540_v15 = vadd.f32 %v1008_v28, %v517_v4  ;;  %v485_v16 = vmul.f32 %v682_v5, %v437_v52  ;;  %v262_v17 = vpop.xlane.xlu1 %261  ;;  %v259_v18 = vpop.xlane.xlu0 %258  ;;  %v447_v4 = vsub.f32 %v898_v62, %v1003_v42 }
 0x195   :  { %685 = vrsqrt.f32 %v456_v6  ;;  %v432_v19 = vmax.f32 %v416_v11, 0.0  ;;  %v431_v20 = vmax.f32 %v415_v14, 0.0  ;;  %v1029_v25 = vmul.f32 0.010416667, %v262_v17 }
 0x196   :  { %556 = vst.msk [vmem:[#allocation2 + $0x48] sm:$0xff] %vm244_vm1, %v540_v15  ;;  %v508_v57 = vmul.f32 %v997_v37, %v485_v16  ;;  %687 = vrsqrt.f32 %v455_v10  ;;  %v1031_v39 = vmul.f32 0.010416667, %v259_v18 }
 0x197   :  { %v684_v21 = vpop.eup %683  ;;  %v464_v23 = vadd.f32 1e-05, %v432_v19  ;;  %v463_v27 = vadd.f32 1e-05, %v431_v20  ;;  %v394_v47 = vmul.f32 %v1029_v25, %v1029_v25 }
 0x198   :  { %v531_v30 = vadd.f32 %v1008_v28, %v508_v57  ;;  %v493_v35 = vmul.f32 %v684_v21, %v445_v32  ;;  %v286_v36 = vpop.xlane.xlu1 %285  ;;  %v283_v38 = vpop.xlane.xlu0 %282  ;;  %v393_v48 = vmul.f32 %v1031_v39, %v1031_v39 }
 0x199   :  { %689 = vrsqrt.f32 %v464_v23  ;;  %v1036_v43 = vmul.f32 0.010416667, %v286_v36  ;;  %v1045_v53 = vmul.f32 0.010416667, %v283_v38 }
 0x19a   :  { %547 = vst.msk [vmem:[#allocation2] sm:$0xff] %vm244_vm1, %v531_v30  ;;  %v516_v40 = vmul.f32 %v997_v37, %v493_v35  ;;  %691 = vrsqrt.f32 %v463_v27 }
 0x19b   :  { %v402_v1 = vmul.f32 %v1036_v43, %v1036_v43  ;;  %v401_v34 = vmul.f32 %v1045_v53, %v1045_v53 }
 0x19c   :  { %v539_v7 = vadd.f32 %v1008_v28, %v516_v40  ;;  %v326_v44 = vpop.xlane.xlu1 %325  ;;  %v323_v45 = vpop.xlane.xlu0 %322 }
 0x19d   :  { %v378_v49 = vmul.f32 0.010416667, %v326_v44  ;;  %v377_v50 = vmul.f32 0.010416667, %v323_v45 }
 0x19e   :  { %555 = vst.msk [vmem:[#allocation2 + $0x40] sm:$0xff] %vm244_vm1, %v539_v7 }
 0x19f   :  { %v686_v55 = vpop.eup %685  ;;  %v410_v58 = vsub.f32 %v378_v49, %v394_v47  ;;  %v409_v59 = vsub.f32 %v377_v50, %v393_v48 }
 0x1a0   :  { %v688_v60 = vpop.eup %687  ;;  %v488_v0 = vmul.f32 %v686_v55, %v440_v51  ;;  %v350_v2 = vpop.xlane.xlu1 %349  ;;  %v442_v55 = vsub.f32 %v916_v8, %v1029_v25 }
 0x1a1   :  { %v347_v46 = vpop.xlane.xlu0 %346  ;;  %v487_v22 = vmul.f32 %v688_v60, %v439_v56  ;;  %v426_v3 = vmax.f32 %v410_v58, 0.0  ;;  %v425_v29 = vmax.f32 %v409_v59, 0.0  ;;  %v386_v52 = vmul.f32 0.010416667, %v350_v2 }
 0x1a2   :  { %v511_v61 = vmul.f32 %v997_v37, %v488_v0  ;;  %v385_v5 = vmul.f32 0.010416667, %v347_v46  ;;  %v441_v59 = vsub.f32 %v919_v9, %v1031_v39 }
 0x1a3   :  { %v690_v54 = vpop.eup %689  ;;  %v510_v41 = vmul.f32 %v997_v37, %v487_v22  ;;  %v458_v6 = vadd.f32 1e-05, %v426_v3  ;;  %v457_v10 = vadd.f32 1e-05, %v425_v29  ;;  %v418_v11 = vsub.f32 %v386_v52, %v402_v1 }
 0x1a4   :  { %v692_v14 = vpop.eup %691  ;;  %v534_v15 = vadd.f32 %v1008_v28, %v511_v61  ;;  %v496_v16 = vmul.f32 %v690_v54, %v448_v63  ;;  %v417_v17 = vsub.f32 %v385_v5, %v401_v34  ;;  %v268_v18 = vpop.xlane.xlu1 %267  ;;  %v450_v1 = vsub.f32 %v924_v12, %v1036_v43 }
 0x1a5   :  { %v265_v19 = vpop.xlane.xlu0 %264  ;;  %v533_v62 = vadd.f32 %v1008_v28, %v510_v41  ;;  %v495_v42 = vmul.f32 %v692_v14, %v447_v4  ;;  %693 = vrsqrt.f32 %v458_v6  ;;  %v434_v20 = vmax.f32 %v418_v11, 0.0 }
 0x1a6   :  { %550 = vst.msk [vmem:[#allocation2 + $0x18] sm:$0xff] %vm244_vm1, %v534_v15  ;;  %v519_v32 = vmul.f32 %v997_v37, %v496_v16  ;;  %695 = vrsqrt.f32 %v457_v10  ;;  %v433_v57 = vmax.f32 %v417_v17, 0.0  ;;  %v1067_v40 = vmul.f32 0.010416667, %v268_v18 }
 0x1a7   :  { %549 = vst.msk [vmem:[#allocation2 + $0x10] sm:$0xff] %vm244_vm1, %v533_v62  ;;  %v518_v21 = vmul.f32 %v997_v37, %v495_v42  ;;  %v466_v23 = vadd.f32 1e-05, %v434_v20  ;;  %v1069_v7 = vmul.f32 0.010416667, %v265_v19  ;;  %v449_v4 = vsub.f32 %v927_v13, %v1045_v53 }
 0x1a8   :  { %v542_v27 = vadd.f32 %v1008_v28, %v519_v32  ;;  %v465_v30 = vadd.f32 1e-05, %v433_v57  ;;  %v292_v35 = vpop.xlane.xlu1 %291  ;;  %v396_v48 = vmul.f32 %v1067_v40, %v1067_v40  ;;  %v444_v20 = vsub.f32 %v948_v24, %v1067_v40 }
 0x1a9   :  { %v289_v36 = vpop.xlane.xlu0 %288  ;;  %v541_v38 = vadd.f32 %v1008_v28, %v518_v21  ;;  %697 = vrsqrt.f32 %v466_v23  ;;  %v1073_v44 = vmul.f32 0.010416667, %v292_v35  ;;  %v395_v49 = vmul.f32 %v1069_v7, %v1069_v7 }
 0x1aa   :  { %558 = vst.msk [vmem:[#allocation2 + $0x58] sm:$0xff] %vm244_vm1, %v542_v27  ;;  %699 = vrsqrt.f32 %v465_v30  ;;  %v371_v56 = vmul.f32 0.010416667, %v289_v36  ;;  %v443_v57 = vsub.f32 %v951_v26, %v1069_v7 }
 0x1ab   :  { %557 = vst.msk [vmem:[#allocation2 + $0x50] sm:$0xff] %vm244_vm1, %v541_v38  ;;  %v404_v46 = vmul.f32 %v1073_v44, %v1073_v44  ;;  %v452_v30 = vsub.f32 %v956_v31, %v1073_v44 }
 0x1ac   :  { %v332_v45 = vpop.xlane.xlu1 %331  ;;  %v403_v39 = vmul.f32 %v371_v56, %v371_v56  ;;  %v451_v38 = vsub.f32 %v959_v33, %v371_v56 }
 0x1ad   :  { %v329_v47 = vpop.xlane.xlu0 %328  ;;  %v380_v50 = vmul.f32 0.010416667, %v332_v45 }
 0x1ae   :  { %v379_v51 = vmul.f32 0.010416667, %v329_v47 }
 0x1af   :  { %v694_v58 = vpop.eup %693  ;;  %v412_v60 = vsub.f32 %v380_v50, %v396_v48 }
 0x1b0   :  { %v411_v63 = vsub.f32 %v379_v51, %v395_v49  ;;  %v696_v0 = vpop.eup %695  ;;  %v490_v2 = vmul.f32 %v694_v58, %v442_v55  ;;  %v356_v22 = vpop.xlane.xlu1 %355 }
 0x1b1   :  { %v353_v3 = vpop.xlane.xlu0 %352  ;;  %v489_v29 = vmul.f32 %v696_v0, %v441_v59  ;;  %v428_v52 = vmax.f32 %v412_v60, 0.0  ;;  %v388_v25 = vmul.f32 0.010416667, %v356_v22 }
 0x1b2   :  { %v427_v8 = vmax.f32 %v411_v63, 0.0  ;;  %v513_v9 = vmul.f32 %v997_v37, %v490_v2  ;;  %v387_v61 = vmul.f32 0.010416667, %v353_v3 }
 0x1b3   :  { %v698_v34 = vpop.eup %697  ;;  %v512_v12 = vmul.f32 %v997_v37, %v489_v29  ;;  %v460_v43 = vadd.f32 1e-05, %v428_v52  ;;  %v420_v54 = vsub.f32 %v388_v25, %v404_v46 }
 0x1b4   :  { %v459_v5 = vadd.f32 1e-05, %v427_v8  ;;  %v700_v41 = vpop.eup %699  ;;  %v536_v6 = vadd.f32 %v1008_v28, %v513_v9  ;;  %v498_v10 = vmul.f32 %v698_v34, %v450_v1  ;;  %v419_v11 = vsub.f32 %v387_v61, %v403_v39 }
 0x1b5   :  { %v535_v14 = vadd.f32 %v1008_v28, %v512_v12  ;;  %v497_v15 = vmul.f32 %v700_v41, %v449_v4  ;;  %701 = vrsqrt.f32 %v460_v43  ;;  %v436_v13 = vmax.f32 %v420_v54, 0.0 }
 0x1b6   :  { %552 = vst.msk [vmem:[#allocation2 + $0x28] sm:$0xff] %vm244_vm1, %v536_v6  ;;  %v521_v53 = vmul.f32 %v997_v37, %v498_v10  ;;  %703 = vrsqrt.f32 %v459_v5  ;;  %v435_v16 = vmax.f32 %v419_v11, 0.0 }
 0x1b7   :  { %551 = vst.msk [vmem:[#allocation2 + $0x20] sm:$0xff] %vm244_vm1, %v535_v14  ;;  %v520_v17 = vmul.f32 %v997_v37, %v497_v15  ;;  %v468_v18 = vadd.f32 1e-05, %v436_v13 }
 0x1b8   :  { %v544_v19 = vadd.f32 %v1008_v28, %v521_v53  ;;  %v467_v62 = vadd.f32 1e-05, %v435_v16 }
 0x1b9   :  { %v543_v42 = vadd.f32 %v1008_v28, %v520_v17  ;;  %705 = vrsqrt.f32 %v468_v18 }
 0x1ba   :  { %560 = vst.msk [vmem:[#allocation2 + $0x68] sm:$0xff] %vm244_vm1, %v544_v19  ;;  %707 = vrsqrt.f32 %v467_v62 }
 0x1bb   :  { %559 = vst.msk [vmem:[#allocation2 + $0x60] sm:$0xff] %vm244_vm1, %v543_v42 }
 0x1bf   :  { %v702_v32 = vpop.eup %701 }
 0x1c0   :  { %v704_v21 = vpop.eup %703  ;;  %v492_v23 = vmul.f32 %v702_v32, %v444_v20 }
 0x1c1   :  { %v491_v27 = vmul.f32 %v704_v21, %v443_v57 }
 0x1c2   :  { %v515_v35 = vmul.f32 %v997_v37, %v492_v23 }
 0x1c3   :  { %v706_v36 = vpop.eup %705  ;;  %v514_v45 = vmul.f32 %v997_v37, %v491_v27 }
 0x1c4   :  { %v708_v47 = vpop.eup %707  ;;  %v538_v24 = vadd.f32 %v1008_v28, %v515_v35  ;;  %v500_v40 = vmul.f32 %v706_v36, %v452_v30 }
 0x1c5   :  { %v537_v48 = vadd.f32 %v1008_v28, %v514_v45  ;;  %v499_v26 = vmul.f32 %v708_v47, %v451_v38 }
 0x1c6   :  { %554 = vst.msk [vmem:[#allocation2 + $0x38] sm:$0xff] %vm244_vm1, %v538_v24  ;;  %v523_v7 = vmul.f32 %v997_v37, %v500_v40 }
 0x1c7   :  { %553 = vst.msk [vmem:[#allocation2 + $0x30] sm:$0xff] %vm244_vm1, %v537_v48  ;;  %v522_v31 = vmul.f32 %v997_v37, %v499_v26 }
 0x1c8   :  { %v546_v33 = vadd.f32 %v1008_v28, %v523_v7 }
 0x1c9   :  { %v545_v44 = vadd.f32 %v1008_v28, %v522_v31 }
 0x1ca   :  { %562 = vst.msk [vmem:[#allocation2 + $0x78] sm:$0xff] %vm244_vm1, %v546_v33 }
 0x1cb   :  { %561 = vst.msk [vmem:[#allocation2 + $0x70] sm:$0xff] %vm244_vm1, %v545_v44 }
 0x1cc   :  { %720 = shalt.err (!%p717_p4)
}
 0x1cd   :  { %s721_s17 = scalar_lea.hbm %s1137_s5, 2048 }
 0x1ce   :  { %p722_p5 = scmp.ne.s32.totalorder %s1137_s5, %s721_s17  ;;  %p725_p6 = scmp.lt.u32.totalorder %s721_s17, %s1137_s5 }
 0x1d0   :  { %p727_p7 = pnand %p725_p6, %p722_p5 }
 0x1d2   :  { %730 = shalt.err (!%p727_p7)
}
 0x1d3   :  { %s734_s22 = smov 128   ;;  %s735_s23 = smov 8  }
 0x1d4   :  { %574 = dma.vmem_to_hbm [thread:$0]  %s569_s4, 2048, %s1137_s5, [#allocation3], %s734_s22, %s734_s22, %s735_s23  }
 0x1d5   :  { %731 = dma.done.wait [#allocation3], 2048  }
 0x1d6   :  { %732 = vsyncadd [#allocation3], 4294965248 }
 0x1d7   :  { %578 = vsyncpa [#allocation3], 1 }

</bundles_post_ra>
